<compile_context>
chip_gen: v5e
topology: v5e:2x2
jax: 0.10.0
libtpu: 0.0.40
codegen_flags: <defaults>
</compile_context>

<pallas_src>
import sys

import jax
import jax.numpy as jnp
from jax.experimental import pallas as pl
from jax.experimental.pallas import tpu as pltpu

NEW_SIZE = 80      # feature dim (new_size in the PyTorch file)
N_REGIONS = 77     # number of reference regions (chicago precincts)
MAX_TILE_T = 256   # rows per grid step for very large target batches
_TINY = 1e-30      # variance clamp -> zero-variance rows give r = 0.0


def _round_up(a, b):
    return ((a + b - 1) // b) * b


def _pearson_kernel(x_ref, yt_ref, o_ref):
    # x_ref : (TILE_T, D)   target rows for this grid step
    # yt_ref: (D, N_PAD)    pre-centered, unit-normalized, transposed references
    #                       (constant index_map -> VMEM-resident across steps)
    # o_ref : (TILE_T, N_PAD) lane-dense correlation output
    x = x_ref[...]
    inv_d = jnp.float32(1.0 / x_ref.shape[-1])
    tiny = jnp.float32(_TINY)

    # Center the target rows (mean as sum * 1/D; no divide).
    xm = x - jnp.sum(x, axis=-1, keepdims=True) * inv_d           # (T, D)
    # Unit-normalize with one EUP rsqrt per row; the clamp makes zero-variance
    # rows come out as exact 0.0 (== float32(sys.float_info.min)), matching the
    # torch NaN-fill path, instead of producing NaN.
    xn = xm * jax.lax.rsqrt(
        jnp.maximum(jnp.sum(xm * xm, axis=-1, keepdims=True), tiny))

    # Pearson r = xn @ yn^T : single MXU pass (K=80), f32 accumulation.
    o_ref[...] = jnp.dot(
        xn, yt_ref[...],
        preferred_element_type=jnp.float32,
        precision=jax.lax.Precision.HIGHEST)


def pearson_pallas(target_rep, chicago_rep):
    """target_rep: (D,) or (T, D); chicago_rep: (N, D).

    Returns (N,) correlations for a single target, or (T, N) for batched targets.
    """
    x = jnp.asarray(target_rep, jnp.float32)
    single = (x.ndim == 1)
    if single:
        x = x[None, :]
    reps = jnp.asarray(chicago_rep, jnp.float32)
    n, d = reps.shape
    t = x.shape[0]
    assert x.shape[1] == d

    # ---- Hoisted reference-side work (done once, outside the grid loop) ----
    n_pad = max(_round_up(n, 128), 128)
    reps_p = jnp.zeros((n_pad, d), jnp.float32).at[:n].set(reps)
    ym = reps_p - jnp.sum(reps_p, axis=-1, keepdims=True) * jnp.float32(1.0 / d)
    yn = ym * jax.lax.rsqrt(
        jnp.maximum(jnp.sum(ym * ym, axis=-1, keepdims=True), jnp.float32(_TINY)))
    yt = yn.T                                   # (D, N_PAD), MXU-ready layout

    # ---- Target tiling: one grid step for small/medium T, 256-row tiles else ----
    tile_t = min(_round_up(t, 8), MAX_TILE_T)
    t_pad = _round_up(t, tile_t)
    x_p = jnp.zeros((t_pad, d), jnp.float32).at[:t].set(x)

    grid_steps = t_pad // tile_t
    sems = ("parallel",) if grid_steps > 1 else ("arbitrary",)

    out = pl.pallas_call(
        _pearson_kernel,
        out_shape=jax.ShapeDtypeStruct((t_pad, n_pad), jnp.float32),
        grid_spec=pltpu.PrefetchScalarGridSpec(
            num_scalar_prefetch=0,
            grid=(grid_steps,),
            in_specs=[
                # target tiles: new block each grid step
                pl.BlockSpec((tile_t, d), lambda i: (i, 0)),
                # normalized references: constant block -> stays VMEM-resident
                pl.BlockSpec((d, n_pad), lambda i: (0, 0)),
            ],
            out_specs=pl.BlockSpec((tile_t, n_pad), lambda i: (i, 0)),
        ),
        compiler_params=pltpu.CompilerParams(dimension_semantics=sems),
    )(x_p, yt)

    out = out[:t, :n]
    return out[0] if single else out


def _pearson_reference(targets, chicago_rep):
    """Pure-JAX reference matching torch.corrcoef semantics (exact f32 reduce)."""
    x = jnp.asarray(targets, jnp.float32)
    single = (x.ndim == 1)
    if single:
        x = x[None, :]
    y = jnp.asarray(chicago_rep, jnp.float32)
    xm = x - jnp.mean(x, axis=-1, keepdims=True)
    ym = y - jnp.mean(y, axis=-1, keepdims=True)
    num = jnp.sum(xm[:, None, :] * ym[None, :, :], axis=-1)       # (T, N) exact f32
    den = (jnp.sqrt(jnp.sum(xm * xm, axis=-1, keepdims=True)) *
           jnp.sqrt(jnp.sum(ym * ym, axis=-1))[None, :])
    r = num / den
    r = jnp.where(jnp.isnan(r), jnp.float32(sys.float_info.min), r)
    return r[0] if single else r


if __name__ == "__main__":
    key = jax.random.PRNGKey(0)
    k1, k2, k3 = jax.random.split(key, 3)

    # Deterministic synthetic stand-ins for the module's inputs:
    #   chicago_target_region_representation : (80,)
    #   chicago_rep (normally pickle-loaded)  : (77, 80)
    # TODO(synk): pickle file I/O for chicago_rep has no Pallas equivalent;
    #             it is synthesized deterministically here instead.
    target_rep = jax.random.normal(k1, (NEW_SIZE,), dtype=jnp.float32)
    chicago_rep = jax.random.normal(k2, (N_REGIONS, NEW_SIZE), dtype=jnp.float32)

    # Single-target path (matches Pearson.forward: 77 correlation values).
    corr = jax.block_until_ready(pearson_pallas(target_rep, chicago_rep))
    ref = _pearson_reference(target_rep, chicago_rep)
    assert corr.shape == (N_REGIONS,)
    assert bool(jnp.all(jnp.abs(corr - ref) < 2e-5)), "single-target mismatch"
    assert bool(jnp.all(jnp.abs(corr) <= 1.0 + 1e-5)), "correlation out of range"

    # Batched-target path: T=40 now runs in a SINGLE grid step (40-row tile),
    # with the normalized chicago_rep block VMEM-resident.
    many_targets = jax.random.normal(k3, (40, NEW_SIZE), dtype=jnp.float32)
    corr_b = jax.block_until_ready(pearson_pallas(many_targets, chicago_rep))
    ref_b = _pearson_reference(many_targets, chicago_rep)
    assert corr_b.shape == (40, N_REGIONS)
    assert bool(jnp.all(jnp.abs(corr_b - ref_b) < 2e-5)), "batched-target mismatch"

    # Large batch: exercises the multi-step (256-row tile) path on the MXU.
    big_targets = jax.random.normal(k3, (600, NEW_SIZE), dtype=jnp.float32)
    corr_big = jax.block_until_ready(pearson_pallas(big_targets, chicago_rep))
    ref_big = _pearson_reference(big_targets, chicago_rep)
    assert corr_big.shape == (600, N_REGIONS)
    assert bool(jnp.all(jnp.abs(corr_big - ref_big) < 2e-5)), "large-batch mismatch"

    print("KERNEL_OK")
</pallas_src>

<mosaic_0001>
module attributes {stable_mosaic.version = 11 : i64} {
  func.func @_pearson_kernel(%arg0: i32, %arg1: memref<8x80xf32, #tpu.memory_space<vmem>>, %arg2: memref<80x128xf32, #tpu.memory_space<vmem>>, %arg3: memref<8x128xf32, #tpu.memory_space<vmem>>) attributes {dimension_semantics = [#tpu.dimension_semantics<arbitrary>], iteration_bounds = array<i64: 1>, scalar_prefetch = 0 : i64, scratch_operands = 0 : i64, tpu.core_type = #tpu.core_type<tc>, window_params = [{transform_indices = @transform_0, window_bounds = array<i64: 8, 80>}, {pipeline_mode = #tpu.pipeline_mode<synchronous>, transform_indices = @transform_1, window_bounds = array<i64: 80, 128>}, {transform_indices = @transform_2, window_bounds = array<i64: 8, 128>}]} {
    %c0 = arith.constant 0 : index
    %c0_0 = arith.constant 0 : index
    %0 = vector.load %arg1[%c0, %c0_0] : memref<8x80xf32, #tpu.memory_space<vmem>>, vector<8x80xf32>
    %cst = arith.constant dense<0.000000e+00> : vector<8xf32>
    %1 = vector.multi_reduction <add>, %0, %cst [1] : vector<8x80xf32> to vector<8xf32>
    %2 = vector.shape_cast %1 : vector<8xf32> to vector<8x1xf32>
    %cst_1 = arith.constant 1.250000e-02 : f32
    %3 = vector.broadcast %cst_1 : f32 to vector<8x1xf32>
    %4 = arith.mulf %2, %3 : vector<8x1xf32>
    %5 = vector.broadcast %4 : vector<8x1xf32> to vector<8x80xf32>
    %6 = arith.subf %0, %5 : vector<8x80xf32>
    %7 = arith.mulf %6, %6 : vector<8x80xf32>
    %cst_2 = arith.constant dense<0.000000e+00> : vector<8xf32>
    %8 = vector.multi_reduction <add>, %7, %cst_2 [1] : vector<8x80xf32> to vector<8xf32>
    %9 = vector.shape_cast %8 : vector<8xf32> to vector<8x1xf32>
    %cst_3 = arith.constant 1.000000e-30 : f32
    %10 = vector.broadcast %cst_3 : f32 to vector<8x1xf32>
    %11 = arith.maximumf %9, %10 : vector<8x1xf32>
    %12 = math.rsqrt %11 : vector<8x1xf32>
    %13 = vector.broadcast %12 : vector<8x1xf32> to vector<8x80xf32>
    %14 = arith.mulf %6, %13 : vector<8x80xf32>
    %c0_4 = arith.constant 0 : index
    %c0_5 = arith.constant 0 : index
    %15 = vector.load %arg2[%c0_4, %c0_5] : memref<80x128xf32, #tpu.memory_space<vmem>>, vector<80x128xf32>
    %cst_6 = arith.constant dense<0.000000e+00> : vector<8x128xf32>
    %16 = tpu.matmul %14, %15, %cst_6 {dimension_numbers = #tpu.dot_dimension_numbers<[1], [0], [0], [1], [0, 0, 1, 1], [], []>, precision = #tpu.contract_precision<fp32>} : vector<8x80xf32>, vector<80x128xf32>, vector<8x128xf32> -> vector<8x128xf32>
    %c0_7 = arith.constant 0 : index
    %c0_8 = arith.constant 0 : index
    %17 = vector.load %arg3[%c0_7, %c0_8] : memref<8x128xf32, #tpu.memory_space<vmem>>, vector<8x128xf32>
    tpu.vector_store %arg3[%c0_7, %c0_8], %16 {strides = array<i32>} : memref<8x128xf32, #tpu.memory_space<vmem>>, vector<8x128xf32>,
    return
  }
  func.func @transform_0(%arg0: i32) -> (i32, i32) {
    %c0_i32 = arith.constant 0 : i32
    %c0_i32_0 = arith.constant 0 : i32
    return %arg0, %c0_i32 : i32, i32
  }
  func.func @transform_1(%arg0: i32) -> (i32, i32) {
    %c0_i32 = arith.constant 0 : i32
    %c0_i32_0 = arith.constant 0 : i32
    %c0_i32_1 = arith.constant 0 : i32
    return %c0_i32, %c0_i32_0 : i32, i32
  }
  func.func @transform_2(%arg0: i32) -> (i32, i32) {
    %c0_i32 = arith.constant 0 : i32
    %c0_i32_0 = arith.constant 0 : i32
    return %arg0, %c0_i32 : i32, i32
  }
}

</mosaic_0001>

<bundles_post_ra>
// kernel: tpu_custom_call.1
= control target key start
LH: loop header
LB: loop body
LE: loop exit
PB: predicated region body
PF: predicated region fallthrough
CT: control target
= control target key end

     0   :  { %7 = vsyncpa [#allocation3], 0  ;;  %s565_s0 = inlined_call_operand.hbm [shape: f32[8,80], index: 0, kind: input, shape index: {}]   ;;  %s566_s1 = inlined_call_operand.hbm [shape: f32[80,128], index: 1, kind: input, shape index: {}]   ;;  %s567_s2 = inlined_call_operand.hbm [shape: f32[8,128], index: 2, kind: output, shape index: {}]  }
   0x1   :  { %8 = vsyncpa [#allocation6], 0 }
   0x2   :  { %9 = vsyncpa [#allocation4], 0  ;;  %s15_s11 = sshll.u32 %s565_s0, 4  ;;  %s445_s12 = smov [#allocation2]   ;;  %s16_s11 = int_to_ptr.hbm [resolvable:$true] %s15_s11 }
   0x3   :  { %s17_s13 = sshll.u32 %s445_s12, 4  ;;  %s25_s16 = sshll.u32 %s566_s1, 4  ;;  %s18_s13 = int_to_ptr.vmem [resolvable:$true] %s17_s13  ;;  %s26_s16 = int_to_ptr.hbm [resolvable:$true] %s25_s16 }
   0x4   :  { %20 = dma.hbm_to_vmem [thread:$0]  %s16_s11, 128, %s18_s13, [#allocation3]  }
   0x5   :  { %s446_s17 = smov [#allocation5]   ;;  %s447_s19 = smov 128  }
   0x6   :  { %s27_s18 = sshll.u32 %s446_s17, 4  ;;  %s448_s20 = smov 8   ;;  %s28_s18 = int_to_ptr.vmem [resolvable:$true] %s27_s18 }
   0x7   :  { %33 = dma.hbm_to_vmem [thread:$0]  %s26_s16, 1280, %s28_s18, [#allocation6], %s447_s19, %s447_s19, %s448_s20  }
   0x8   :  { %439 = dma.done.wait [#allocation3], 128  }
   0x9   :  { %440 = vsyncadd [#allocation3], 4294967168 }
   0xa   :  { %441 = dma.done.wait [#allocation6], 1280  }
   0xb   :  { %442 = vsyncadd [#allocation6], 4294966016  ;;  %vm43_vm0 = vcmask 654336   ;;  %v42_v0 = vld [vmem:[#allocation2] sm:$0xff]  ;;  %v74_v2 = vld [vmem:[#allocation5 + $0x48] sm:$0xff]  ;;  %s449_s0 = smov [#allocation7]  }
   0xc   :  { %v44_v1 = vsel %vm43_vm0, %v42_v0, 0.0  ;;  %v73_v3 = vld [vmem:[#allocation5 + $0x40] sm:$0xff]  ;;  %v72_v4 = vld [vmem:[#allocation5 + $0x38] sm:$0xff]  ;;  %v472_v5 = vand.u32 4294901760, %v74_v2  ;;  %v71_v25 = vld [vmem:[#allocation5 + $0x30] sm:$0xff]  ;;  %s347_s1 = sshll.u32 %s449_s0, 4  ;;  %s348_s1 = int_to_ptr.vmem [resolvable:$true] %s347_s1 }
   0xd   :  { %45 = vadd.xlane.f32.xlu0 %v44_v1  ;;  %v474_v6 = vand.u32 4294901760, %v73_v3  ;;  %v476_v7 = vand.u32 4294901760, %v72_v4  ;;  %v513_v26 = vand.u32 4294901760, %v71_v25  ;;  %v70_v27 = vld [vmem:[#allocation5 + $0x28] sm:$0xff]  ;;  %v69_v30 = vld [vmem:[#allocation5 + $0x20] sm:$0xff]  ;;  %v68_v34 = vld [vmem:[#allocation5 + $0x18] sm:$0xff] }
   0xe   :  { %v479_v8 = vsub.f32 %v74_v2, %v472_v5  ;;  %85 = vmatpush.msra.mxu0 %v472_v5  ;;  %233 = vmatpush.msra.mxu3 %v472_v5  ;;  %v518_v29 = vand.u32 4294901760, %v70_v27  ;;  %v526_v33 = vand.u32 4294901760, %v69_v30  ;;  %v536_v38 = vand.u32 4294901760, %v68_v34  ;;  %v67_v39 = vld [vmem:[#allocation5 + $0x10] sm:$0xff]  ;;  %v66_v45 = vld [vmem:[#allocation5 + $0x8] sm:$0xff]  ;;  %v65_v51 = vld [vmem:[#allocation5] sm:$0xff] }
   0xf   :  { %v482_v9 = vsub.f32 %v73_v3, %v474_v6  ;;  %v485_v10 = vsub.f32 %v72_v4, %v476_v7  ;;  %v516_v28 = vsub.f32 %v71_v25, %v513_v26  ;;  %v98_v44 = vand.u32 4294901760, %v67_v39  ;;  %s349_s23 = sshll.u32 %s567_s2, 4  ;;  %s350_s23 = int_to_ptr.hbm [resolvable:$true] %s349_s23 }
  0x10   :  { %v121_v11 = vand.u32 4294901760, %v479_v8  ;;  %87 = vmatpush.msra.mxu0 %v474_v6  ;;  %192 = vmatpush.msra.mxu2 %v479_v8  ;;  %v524_v32 = vsub.f32 %v70_v27, %v518_v29  ;;  %v150_v37 = vsub.f32 %v69_v30, %v526_v33  ;;  %v156_v43 = vsub.f32 %v68_v34, %v536_v38 }
  0x11   :  { %v127_v12 = vand.u32 4294901760, %v482_v9  ;;  %v133_v13 = vand.u32 4294901760, %v485_v10  ;;  %235 = vmatpush.msra.mxu3 %v474_v6  ;;  %v139_v31 = vand.u32 4294901760, %v516_v28  ;;  %v100_v49 = vand.u32 4294901760, %v66_v45 }
  0x12   :  { %v122_v14 = vsub.f32 %v479_v8, %v121_v11  ;;  %89 = vmatpush.msra.mxu0 %v476_v7  ;;  %195 = vmatpush.msra.mxu2 %v482_v9  ;;  %v145_v36 = vand.u32 4294901760, %v524_v32  ;;  %v151_v42 = vand.u32 4294901760, %v150_v37  ;;  %v157_v48 = vand.u32 4294901760, %v156_v43 }
  0x13   :  { %v128_v15 = vsub.f32 %v482_v9, %v127_v12  ;;  %v134_v16 = vsub.f32 %v485_v10, %v133_v13  ;;  %237 = vmatpush.msra.mxu3 %v476_v7  ;;  %v140_v35 = vsub.f32 %v516_v28, %v139_v31  ;;  %v162_v50 = vsub.f32 %v67_v39, %v98_v44 }
  0x14   :  { %v123_v17 = vand.u32 4294901760, %v122_v14  ;;  %198 = vmatpush.msra.mxu2 %v485_v10  ;;  %91 = vmatpush.msra.mxu0 %v513_v26  ;;  %v146_v41 = vsub.f32 %v524_v32, %v145_v36  ;;  %v152_v47 = vsub.f32 %v150_v37, %v151_v42  ;;  %v158_v53 = vsub.f32 %v156_v43, %v157_v48 }
  0x15   :  { %v129_v18 = vand.u32 4294901760, %v128_v15  ;;  %v135_v19 = vand.u32 4294901760, %v134_v16  ;;  %239 = vmatpush.msra.mxu3 %v513_v26  ;;  %v141_v40 = vand.u32 4294901760, %v140_v35  ;;  %v168_v54 = vsub.f32 %v66_v45, %v100_v49 }
  0x16   :  { %124 = vmatpush.msra.mxu1 %v123_v17  ;;  %93 = vmatpush.msra.mxu0 %v518_v29  ;;  %v147_v46 = vand.u32 4294901760, %v146_v41  ;;  %v153_v52 = vand.u32 4294901760, %v152_v47  ;;  %v102_v55 = vand.u32 4294901760, %v65_v51  ;;  %v163_v56 = vand.u32 4294901760, %v162_v50 }
  0x17   :  { %201 = vmatpush.msra.mxu2 %v516_v28  ;;  %241 = vmatpush.msra.mxu3 %v518_v29  ;;  %v159_v57 = vand.u32 4294901760, %v158_v53  ;;  %v169_v58 = vand.u32 4294901760, %v168_v54 }
  0x18   :  { %130 = vmatpush.msra.mxu1 %v129_v18  ;;  %95 = vmatpush.msra.mxu0 %v526_v33  ;;  %v174_v59 = vsub.f32 %v65_v51, %v102_v55  ;;  %v164_v60 = vsub.f32 %v162_v50, %v163_v56 }
  0x19   :  { %204 = vmatpush.msra.mxu2 %v524_v32  ;;  %243 = vmatpush.msra.mxu3 %v526_v33  ;;  %v170_v61 = vsub.f32 %v168_v54, %v169_v58 }
  0x1a   :  { %136 = vmatpush.msra.mxu1 %v135_v19  ;;  %97 = vmatpush.msra.mxu0 %v536_v38  ;;  %v175_v62 = vand.u32 4294901760, %v174_v59  ;;  %v165_v63 = vand.u32 4294901760, %v164_v60 }
  0x1b   :  { %207 = vmatpush.msra.mxu2 %v150_v37  ;;  %245 = vmatpush.msra.mxu3 %v536_v38 }
  0x1c   :  { %142 = vmatpush.msra.mxu1 %v141_v40  ;;  %99 = vmatpush.msra.mxu0 %v98_v44  ;;  %v176_v1 = vsub.f32 %v174_v59, %v175_v62 }
  0x1d   :  { %210 = vmatpush.msra.mxu2 %v156_v43  ;;  %247 = vmatpush.msra.mxu3 %v98_v44 }
  0x1e   :  { %148 = vmatpush.msra.mxu1 %v147_v46  ;;  %101 = vmatpush.msra.mxu0 %v100_v49  ;;  %v177_v2 = vand.u32 4294901760, %v176_v1 }
  0x1f   :  { %213 = vmatpush.msra.mxu2 %v162_v50  ;;  %249 = vmatpush.msra.mxu3 %v100_v49 }
  0x20   :  { %154 = vmatpush.msra.mxu1 %v153_v52  ;;  %103 = vmatpush.msra.mxu0 %v102_v55 }
  0x21   :  { %216 = vmatpush.msra.mxu2 %v168_v54  ;;  %251 = vmatpush.msra.mxu3 %v102_v55 }
  0x22   :  { %160 = vmatpush.msra.mxu1 %v159_v57  ;;  %268 = vmatpush.msrb.mxu0 %v121_v11 }
  0x23   :  { %219 = vmatpush.msra.mxu2 %v174_v59 }
  0x24   :  { %272 = vmatpush.msrb.mxu0 %v127_v12  ;;  %166 = vmatpush.msra.mxu1 %v165_v63 }
  0x26   :  { %276 = vmatpush.msrb.mxu0 %v133_v13 }
  0x28   :  { %280 = vmatpush.msrb.mxu0 %v139_v31 }
  0x2a   :  { %284 = vmatpush.msrb.mxu0 %v145_v36 }
  0x2c   :  { %288 = vmatpush.msrb.mxu0 %v151_v42 }
  0x2e   :  { %292 = vmatpush.msrb.mxu0 %v157_v48 }
  0x30   :  { %296 = vmatpush.msrb.mxu0 %v163_v56 }
  0x32   :  { %300 = vmatpush.msrb.mxu0 %v169_v58 }
  0x34   :  { %304 = vmatpush.msrb.mxu0 %v175_v62 }
  0x80   :  { %v46_v20 = vpop.xlane.xlu0 %45 }
  0x81   :  { %v47_v21 = vmul.f32 0.0125, %v46_v20 }
  0x83   :  { %v508_v22 = vsub.f32 %v42_v0, %v47_v21  ;;  %v171_v0 = vand.u32 4294901760, %v170_v61 }
  0x85   :  { %v49_v23 = vmul.f32 %v508_v22, %v508_v22  ;;  %172 = vmatpush.msra.mxu1 %v171_v0 }
  0x87   :  { %v50_v24 = vsel %vm43_vm0, %v49_v23, 0.0  ;;  %178 = vmatpush.msra.mxu1 %v177_v2 }
  0x88   :  { %51 = vadd.xlane.f32.xlu0 %v50_v24 }
  0x89   :  { %317 = vmatpush.msrb.mxu1 %v472_v5 }
  0x8b   :  { %319 = vmatpush.msrb.mxu1 %v474_v6 }
  0x8d   :  { %321 = vmatpush.msrb.mxu1 %v476_v7 }
  0x8f   :  { %323 = vmatpush.msrb.mxu1 %v513_v26 }
  0x91   :  { %325 = vmatpush.msrb.mxu1 %v518_v29 }
  0x93   :  { %327 = vmatpush.msrb.mxu1 %v526_v33 }
  0x95   :  { %329 = vmatpush.msrb.mxu1 %v536_v38 }
  0x97   :  { %331 = vmatpush.msrb.mxu1 %v98_v44 }
  0x99   :  { %333 = vmatpush.msrb.mxu1 %v100_v49 }
  0x9b   :  { %335 = vmatpush.msrb.mxu1 %v102_v55 }
  0xfb   :  { %v52_v3 = vpop.xlane.xlu0 %51 }
  0xfc   :  { %v53_v4 = vmax.f32 %v52_v3, 1e-30 }
  0xfe   :  { %365 = vrsqrt.f32 %v53_v4  ;;  %vm60_vm2 = vweird.f32 %v53_v4 }
 0x104   :  { %v366_v5 = vpop.eup %365 }
 0x105   :  { %v55_v6 = vmul.f32 %v366_v5, %v53_v4  ;;  %vm61_vm1 = vweird.f32 %v366_v5 }
 0x106   :  { %vm62_vm3 = vmor %vm60_vm2, %vm61_vm1 }
 0x107   :  { %v56_v7 = vmul.f32 %v366_v5, %v55_v6 }
 0x109   :  { %v57_v8 = vmul.f32 0.5, %v56_v7 }
 0x10b   :  { %v58_v9 = vsub.f32 1.5, %v57_v8 }
 0x10d   :  { %v59_v10 = vmul.f32 %v366_v5, %v58_v9 }
 0x10f   :  { %v63_v11 = vsel %vm62_vm3, %v366_v5, %v59_v10 }
 0x110   :  { %v64_v12 = vmul.f32 %v63_v11, %v508_v22 }
 0x112   :  { %v76_v13 = vsel %vm43_vm0, %v64_v12, 0 }
 0x113   :  { %v104_v14 = vand.u32 4294901760, %v76_v13 }
 0x115   :  { %180 = vmatmul.f32.vlgmr.msra.gmra.mxu1 %v104_v14  ;;  %v105_v15 = vsub.f32 %v76_v13, %v104_v14 }
 0x117   :  { %222 = vmatmul.f32.vlgmr.msra.gmra.mxu2 %v105_v15  ;;  %v106_v16 = vand.u32 4294901760, %v105_v15 }
 0x119   :  { %255 = vmatmul.f32.vlgmr.msra.gmra.mxu3 %v106_v16  ;;  %v107_v17 = vsub.f32 %v105_v15, %v106_v16 }
 0x11b   :  { %v108_v18 = vand.u32 4294901760, %v107_v17 }
 0x11d   :  { %109 = vmatmul.f32.vlgmr.msra.gmra.mxu0 %v108_v18  ;;  %337 = vmatmul.f32.vlgmr.msrb.gmra.mxu1 %v104_v14 }
 0x125   :  { %306 = vmatmul.f32.vlgmr.msrb.gmra.mxu0 %v104_v14 }
 0x192   :  { %v181_v19 = vpop.f32.mrf.mxu1 }
 0x19a   :  { %v110_v20 = vpop.f32.mrf.mxu0  ;;  %v223_v23 = vpop.f32.mrf.mxu2 }
 0x19b   :  { %v182_v21 = vadd.f32 %v181_v19, %v110_v20  ;;  %v338_v28 = vpop.f32.mrf.mxu1 }
 0x19c   :  { %v256_v25 = vpop.f32.mrf.mxu3 }
 0x19d   :  { %v224_v24 = vadd.f32 %v223_v23, %v182_v21 }
 0x19f   :  { %v257_v22 = vadd.f32 %v256_v25, %v224_v24 }
 0x1a2   :  { %v307_v26 = vpop.f32.mrf.mxu0 }
 0x1a3   :  { %v308_v27 = vadd.f32 %v307_v26, %v257_v22 }
 0x1a5   :  { %v339_v29 = vadd.f32 %v338_v28, %v308_v27 }
 0x1a7   :  { %341 = vst [vmem:[#allocation7] sm:$0xff] %v339_v29 }
 0x1a8   :  { %352 = dma.vmem_to_hbm [thread:$0]  %s348_s1, 128, %s350_s23, [#allocation4]  }
 0x1a9   :  { %443 = dma.done.wait [#allocation4], 128  }
 0x1aa   :  { %444 = vsyncadd [#allocation4], 4294967168 }
 0x1ab   :  { %357 = vsyncpa [#allocation3], 1 }
 0x1ac   :  { %358 = vsyncpa [#allocation6], 1 }
 0x1ad   :  { %359 = vsyncpa [#allocation4], 1 }

</bundles_post_ra>
